<compile_context>
chip_gen: v5e
topology: v5e:2x2
jax: 0.10.0
libtpu: 0.0.40
codegen_flags: <defaults>
</compile_context>

<pallas_src>
import jax
import jax.numpy as jnp
from jax import lax
from jax.experimental import pallas as pl
from jax.experimental.pallas import tpu as pltpu

EPS = 1e-5


# ------------------------------- VMEM budgets ---------------------------------

_VMEM_LIMIT_CACHE = None


def _vmem_limit_bytes():
    """Scoped-VMEM limit sized to the chip: ~3/4 of physical capacity, capped."""
    global _VMEM_LIMIT_CACHE
    if _VMEM_LIMIT_CACHE is None:
        try:
            cap = int(pltpu.get_tpu_info().vmem_capacity_bytes)
        except Exception:
            cap = 64 * 1024 * 1024          # conservative fallback (v7x per-TC)
        _VMEM_LIMIT_CACHE = max(32 * 1024 * 1024,
                                min(cap * 3 // 4, 100 * 1024 * 1024))
    return _VMEM_LIMIT_CACHE


def _block_budget_bytes():
    # Per-grid-step working set budget (double-buffered inputs/outputs +
    # scratches must fit comfortably under the scoped limit).
    return _vmem_limit_bytes() // 4


def _compiler_params():
    return pltpu.CompilerParams(dimension_semantics=("parallel",),
                                vmem_limit_bytes=_vmem_limit_bytes())


# ------------------------------- helpers -------------------------------------

def _pick_batch_block(n, per_image_bytes, budget_bytes):
    """Largest divisor of n whose block fits the per-step VMEM budget, keeping
    at least 2 grid steps whenever n > 1 (pipelining + dual-TC sharding)."""
    best = 1
    for d in range(1, n + 1):
        if n % d:
            continue
        if d * per_image_bytes > budget_bytes:
            continue
        if d > 1 and n // d < 2:
            continue
        best = d
    return best


def _conv_image_bytes(h, w, cin, cout, c_sc=0):
    # f32 input (x2 buffers) + f32 padded scratch + bf16 im2col scratch
    # + f32 output (x2 buffers) + f32 acc value + optional shortcut (x2 buffers).
    return (h * w * cin * 4 * 2
            + (h + 2) * (w + 2) * cin * 4
            + h * w * 9 * cin * 2
            + h * w * cout * 4 * 3
            + h * w * c_sc * 4 * 2)


def _affine_from_stats(s, sq, count, gamma, beta):
    """(sum, sum_sq) per channel -> BN scale/shift (biased variance, one pass)."""
    mean = s / count
    var = sq / count - mean * mean
    scale = gamma * lax.rsqrt(var + EPS)
    shift = beta - mean * scale
    return scale.reshape(1, -1), shift.reshape(1, -1)


# ------------------------------- kernels --------------------------------------

def _bn_stats_kernel(x_ref, sum_ref, sq_ref):
    # Single pass: per-block channel sum and sum-of-squares.
    c = x_ref.shape[-1]
    x = x_ref[...].astype(jnp.float32).reshape(-1, c)
    sum_ref[...] = jnp.sum(x, axis=0, keepdims=True)[None]
    sq_ref[...] = jnp.sum(x * x, axis=0, keepdims=True)[None]


def _normalize_relu_pad(x_ref, scale_ref, shift_ref, pad_ref):
    # y = relu(x * scale + shift) written into the interior of the padded
    # scratch.  Only the halo border is zeroed (the interior is always
    # overwritten), avoiding a redundant full-buffer store each grid step.
    nb, h, w, cin = x_ref.shape
    scale = scale_ref[...].reshape(1, 1, 1, cin)
    shift = shift_ref[...].reshape(1, 1, 1, cin)
    xn = jnp.maximum(x_ref[...].astype(jnp.float32) * scale + shift, 0.0)
    zrow = jnp.zeros((nb, 1, w + 2, cin), pad_ref.dtype)
    zcol = jnp.zeros((nb, h, 1, cin), pad_ref.dtype)
    pad_ref[:, 0:1, :, :] = zrow
    pad_ref[:, h + 1:h + 2, :, :] = zrow
    pad_ref[:, 1:h + 1, 0:1, :] = zcol
    pad_ref[:, 1:h + 1, w + 1:w + 2, :] = zcol
    pad_ref[:, 1:h + 1, 1:w + 1, :] = xn.astype(pad_ref.dtype)


def _im2col(pad_ref, col_ref, nb, h, w, cin):
    # One explicit relayout: 9 shifted interior views of the padded activation
    # are cast to bf16 once and packed into a lane-contiguous im2col matrix
    # (stores only at lane offsets -> no packed-sublane-offset hazards).
    for ky in range(3):
        for kx in range(3):
            k = 3 * ky + kx
            patch = pad_ref[:, ky:ky + h, kx:kx + w, :]
            patch = patch.reshape(nb * h * w, cin).astype(col_ref.dtype)
            col_ref[:, k * cin:(k + 1) * cin] = patch


def _bn_relu_conv3x3_kernel(x_ref, scale_ref, shift_ref, w_ref,
                            o_ref, sum_ref, sq_ref, pad_ref, col_ref):
    # conv1 stage: out = conv3x3(relu(bn1(x))); also emits per-block
    # (sum, sumsq) of `out` so BN2 stats need no extra HBM pass over c1.
    nb, h, w, cin = x_ref.shape
    cout = w_ref.shape[-1]
    _normalize_relu_pad(x_ref, scale_ref, shift_ref, pad_ref)
    _im2col(pad_ref, col_ref, nb, h, w, cin)
    acc = jnp.dot(col_ref[...], w_ref[...], preferred_element_type=jnp.float32)
    o_ref[...] = acc.reshape(nb, h, w, cout).astype(o_ref.dtype)
    sum_ref[...] = jnp.sum(acc, axis=0, keepdims=True)[None]
    sq_ref[...] = jnp.sum(acc * acc, axis=0, keepdims=True)[None]


def _bn_relu_conv3x3_add_id_kernel(x_ref, scale_ref, shift_ref, w_ref, xs_ref,
                                   o_ref, pad_ref, col_ref):
    # conv2 stage, identity shortcut: out = conv3x3(relu(bn2(x))) + xs.
    # No 1x1 matmul and no shortcut-weight DMA (VPU add only).
    nb, h, w, cin = x_ref.shape
    cout = w_ref.shape[-1]
    _normalize_relu_pad(x_ref, scale_ref, shift_ref, pad_ref)
    _im2col(pad_ref, col_ref, nb, h, w, cin)
    acc = jnp.dot(col_ref[...], w_ref[...], preferred_element_type=jnp.float32)
    acc = acc + xs_ref[...].astype(jnp.float32).reshape(nb * h * w, cout)
    o_ref[...] = acc.reshape(nb, h, w, cout).astype(o_ref.dtype)


def _bn_relu_conv3x3_add_proj_kernel(x_ref, scale_ref, shift_ref, w_ref,
                                     xs_ref, wsc_ref, o_ref, pad_ref, col_ref):
    # conv2 stage, projection shortcut: out = conv3x3(relu(bn2(x))) + xs @ wsc.
    nb, h, w, cin = x_ref.shape
    c_sc = xs_ref.shape[-1]
    cout = w_ref.shape[-1]
    _normalize_relu_pad(x_ref, scale_ref, shift_ref, pad_ref)
    _im2col(pad_ref, col_ref, nb, h, w, cin)
    acc = jnp.dot(col_ref[...], w_ref[...], preferred_element_type=jnp.float32)
    xs = xs_ref[...].reshape(nb * h * w, c_sc).astype(jnp.bfloat16)
    acc = acc + jnp.dot(xs, wsc_ref[...], preferred_element_type=jnp.float32)
    o_ref[...] = acc.reshape(nb, h, w, cout).astype(o_ref.dtype)


# --------------------------- pallas_call wrappers ------------------------------

def bn_stats(x):
    """Per-channel (sum, sum_of_squares) over (N, H, W) of an NHWC tensor."""
    n, h, w, c = x.shape
    nb = _pick_batch_block(n, h * w * c * 4 * 2, _block_budget_bytes())
    gn = n // nb
    part_s, part_sq = pl.pallas_call(
        _bn_stats_kernel,
        out_shape=(jax.ShapeDtypeStruct((gn, 1, c), jnp.float32),
                   jax.ShapeDtypeStruct((gn, 1, c), jnp.float32)),
        grid=(gn,),
        in_specs=[pl.BlockSpec((nb, h, w, c), lambda b: (b, 0, 0, 0))],
        out_specs=(pl.BlockSpec((1, 1, c), lambda b: (b, 0, 0)),
                   pl.BlockSpec((1, 1, c), lambda b: (b, 0, 0))),
        compiler_params=_compiler_params(),
    )(x)
    return jnp.sum(part_s, axis=(0, 1)), jnp.sum(part_sq, axis=(0, 1))  # (C,), (C,)


def bn_relu_conv3x3(x, scale, shift, w_hwio):
    """c = conv3x3(relu(bn(x))), stride 1, pad 1. Returns (c, (sum_c, sumsq_c))."""
    n, h, w, cin = x.shape
    cout = w_hwio.shape[-1]
    w2d = w_hwio.reshape(9 * cin, cout).astype(jnp.bfloat16)
    nb = _pick_batch_block(n, _conv_image_bytes(h, w, cin, cout),
                           _block_budget_bytes())
    gn = n // nb
    # TODO(synk): pack outputs lane-dense (fold W into channels) when cout < 128.
    out, part_s, part_sq = pl.pallas_call(
        _bn_relu_conv3x3_kernel,
        out_shape=(jax.ShapeDtypeStruct((n, h, w, cout), x.dtype),
                   jax.ShapeDtypeStruct((gn, 1, cout), jnp.float32),
                   jax.ShapeDtypeStruct((gn, 1, cout), jnp.float32)),
        grid=(gn,),
        in_specs=[pl.BlockSpec((nb, h, w, cin), lambda b: (b, 0, 0, 0)),
                  pl.BlockSpec((1, cin), lambda b: (0, 0)),
                  pl.BlockSpec((1, cin), lambda b: (0, 0)),
                  pl.BlockSpec((9 * cin, cout), lambda b: (0, 0))],
        out_specs=(pl.BlockSpec((nb, h, w, cout), lambda b: (b, 0, 0, 0)),
                   pl.BlockSpec((1, 1, cout), lambda b: (b, 0, 0)),
                   pl.BlockSpec((1, 1, cout), lambda b: (b, 0, 0))),
        scratch_shapes=[pltpu.VMEM((nb, h + 2, w + 2, cin), jnp.float32),
                        pltpu.VMEM((nb * h * w, 9 * cin), jnp.bfloat16)],
        compiler_params=_compiler_params(),
    )(x, scale, shift, w2d)
    return out, (jnp.sum(part_s, axis=(0, 1)), jnp.sum(part_sq, axis=(0, 1)))


def bn_relu_conv3x3_add(x, scale, shift, w_hwio, xs, wsc=None):
    """out = conv3x3(relu(bn(x))) + shortcut(xs); identity shortcut if wsc is
    None, else a fused 1x1-conv projection (xs @ wsc)."""
    n, h, w, cin = x.shape
    cout = w_hwio.shape[-1]
    c_sc = xs.shape[-1]
    w2d = w_hwio.reshape(9 * cin, cout).astype(jnp.bfloat16)
    nb = _pick_batch_block(n, _conv_image_bytes(h, w, cin, cout, c_sc),
                           _block_budget_bytes())
    gn = n // nb

    in_specs = [pl.BlockSpec((nb, h, w, cin), lambda b: (b, 0, 0, 0)),
                pl.BlockSpec((1, cin), lambda b: (0, 0)),
                pl.BlockSpec((1, cin), lambda b: (0, 0)),
                pl.BlockSpec((9 * cin, cout), lambda b: (0, 0)),
                pl.BlockSpec((nb, h, w, c_sc), lambda b: (b, 0, 0, 0))]
    args = [x, scale, shift, w2d, xs]
    if wsc is None:
        kernel = _bn_relu_conv3x3_add_id_kernel
    else:
        kernel = _bn_relu_conv3x3_add_proj_kernel
        in_specs.append(pl.BlockSpec((c_sc, cout), lambda b: (0, 0)))
        args.append(wsc.astype(jnp.bfloat16))

    return pl.pallas_call(
        kernel,
        out_shape=jax.ShapeDtypeStruct((n, h, w, cout), x.dtype),
        grid=(gn,),
        in_specs=in_specs,
        out_specs=pl.BlockSpec((nb, h, w, cout), lambda b: (b, 0, 0, 0)),
        scratch_shapes=[pltpu.VMEM((nb, h + 2, w + 2, cin), jnp.float32),
                        pltpu.VMEM((nb * h * w, 9 * cin), jnp.bfloat16)],
        compiler_params=_compiler_params(),
    )(*args)


# ------------------------------ module forward --------------------------------

def init_params(key, in_planes, planes, stride=1):
    ks = jax.random.split(key, 7)
    params = {
        "bn1_gamma": 1.0 + 0.1 * jax.random.normal(ks[0], (in_planes,), jnp.float32),
        "bn1_beta": 0.1 * jax.random.normal(ks[1], (in_planes,), jnp.float32),
        "conv1_w": 0.1 * jax.random.normal(ks[2], (3, 3, in_planes, planes), jnp.float32),  # HWIO
        "bn2_gamma": 1.0 + 0.1 * jax.random.normal(ks[3], (planes,), jnp.float32),
        "bn2_beta": 0.1 * jax.random.normal(ks[4], (planes,), jnp.float32),
        "conv2_w": 0.1 * jax.random.normal(ks[5], (3, 3, planes, planes), jnp.float32),      # HWIO
    }
    if stride != 1 or in_planes != planes:
        params["shortcut_w"] = 0.1 * jax.random.normal(ks[6], (in_planes, planes), jnp.float32)
    return params


def wide_basic_forward(x_nchw, params, stride=1):
    """Pallas implementation of wide_basic.forward. x_nchw: (N, Cin, H, W)."""
    x = jnp.transpose(x_nchw, (0, 2, 3, 1))              # NCHW -> NHWC
    n, h, w, cin = x.shape

    # BN1 (training-mode batch statistics, biased variance) -> per-channel affine.
    # TODO(synk): fuse BN1 partial stats into the producer of x (previous block)
    # to drop this extra HBM pass over x.
    s1, sq1 = bn_stats(x)
    scale1, shift1 = _affine_from_stats(s1, sq1, n * h * w,
                                        params["bn1_gamma"], params["bn1_beta"])

    # out = conv1(relu(bn1(x)))  (fused); BN2 stats come back for free.
    c1, (s2, sq2) = bn_relu_conv3x3(x, scale1, shift1, params["conv1_w"])
    if stride != 1:
        # Exact: a strided pad-1 3x3 conv equals the stride-1 conv subsampled.
        # TODO(synk): fold the stride into the conv1 kernel (strided tap loads)
        # to avoid the wasted stride-1 work and the extra stats pass over c1.
        c1 = c1[:, ::stride, ::stride, :]
        s2, sq2 = bn_stats(c1)                           # stats over subsampled c1
    ho, wo = c1.shape[1], c1.shape[2]
    scale2, shift2 = _affine_from_stats(s2, sq2, n * ho * wo,
                                        params["bn2_gamma"], params["bn2_beta"])

    # out = conv2(relu(bn2(out))) + shortcut(x)  (fused residual).
    xs = x if stride == 1 else x[:, ::stride, ::stride, :]
    out = bn_relu_conv3x3_add(c1, scale2, shift2, params["conv2_w"], xs,
                              params.get("shortcut_w"))

    return jnp.transpose(out, (0, 3, 1, 2))              # NHWC -> NCHW
    # TODO(synk): BatchNorm running_mean/running_var updates (training side
    # effect) are not modeled; they do not affect forward() values.


# -------------------------------- reference ------------------------------------

def ref_forward(x_nchw, params, stride=1):
    x = jnp.transpose(x_nchw, (0, 2, 3, 1))
    dn = ("NHWC", "HWIO", "NHWC")

    def bn_relu_ref(t, g, b):
        m = jnp.mean(t, axis=(0, 1, 2))
        v = jnp.mean((t - m) ** 2, axis=(0, 1, 2))
        return jnp.maximum((t - m) * (g / jnp.sqrt(v + EPS)) + b, 0.0)

    h = bn_relu_ref(x, params["bn1_gamma"], params["bn1_beta"])
    c1 = lax.conv_general_dilated(h, params["conv1_w"], (stride, stride),
                                  ((1, 1), (1, 1)), dimension_numbers=dn,
                                  precision=lax.Precision.HIGHEST)
    h2 = bn_relu_ref(c1, params["bn2_gamma"], params["bn2_beta"])
    c2 = lax.conv_general_dilated(h2, params["conv2_w"], (1, 1),
                                  ((1, 1), (1, 1)), dimension_numbers=dn,
                                  precision=lax.Precision.HIGHEST)
    if "shortcut_w" in params:
        wsc = params["shortcut_w"][None, None]           # (1, 1, Cin, P)
        sc = lax.conv_general_dilated(x, wsc, (stride, stride),
                                      ((0, 0), (0, 0)), dimension_numbers=dn,
                                      precision=lax.Precision.HIGHEST)
    else:
        sc = x                                           # identity (stride == 1)
    return jnp.transpose(c2 + sc, (0, 3, 1, 2))


# ---------------------------------- main ----------------------------------------

if __name__ == "__main__":
    key = jax.random.PRNGKey(0)

    # (Cin, planes, stride): projection shortcut, identity shortcut, strided block.
    configs = [(4, 8, 1), (8, 8, 1), (4, 8, 2)]
    N, H, W = 2, 16, 16

    for i, (cin, planes, stride) in enumerate(configs):
        kxi, kpi = jax.random.split(jax.random.fold_in(key, i))
        x = jax.random.normal(kxi, (N, cin, H, W), jnp.float32)
        params = init_params(kpi, cin, planes, stride)

        out = jax.block_until_ready(wide_basic_forward(x, params, stride))
        ref = ref_forward(x, params, stride)

        hout = (H + 2 - 3) // stride + 1
        assert out.shape == (N, planes, hout, hout), out.shape
        err = float(jnp.max(jnp.abs(out - ref)))
        # bf16 MXU operands with f32 accumulation -> ~1e-2 worst-case abs error.
        assert jnp.allclose(out, ref, atol=2e-2, rtol=2e-2), (
            f"config {(cin, planes, stride)}: max abs err = {err}")

    print("KERNEL_OK")
</pallas_src>

<mosaic_0001>
module attributes {stable_mosaic.version = 11 : i64} {
  func.func @_bn_stats_kernel(%arg0: i32, %arg1: memref<1x16x16x4xf32, #tpu.memory_space<vmem>>, %arg2: memref<1x1x4xf32, #tpu.memory_space<vmem>>, %arg3: memref<1x1x4xf32, #tpu.memory_space<vmem>>) attributes {dimension_semantics = [#tpu.dimension_semantics<parallel>], iteration_bounds = array<i64: 2>, scalar_prefetch = 0 : i64, scratch_operands = 0 : i64, tpu.core_type = #tpu.core_type<tc>, window_params = [{transform_indices = @transform_0, window_bounds = array<i64: 1, 16, 16, 4>}, {transform_indices = @transform_1, window_bounds = array<i64: 1, 1, 4>}, {transform_indices = @transform_2, window_bounds = array<i64: 1, 1, 4>}]} {
    %c0 = arith.constant 0 : index
    %c0_0 = arith.constant 0 : index
    %c0_1 = arith.constant 0 : index
    %c0_2 = arith.constant 0 : index
    %0 = vector.load %arg1[%c0, %c0_0, %c0_1, %c0_2] : memref<1x16x16x4xf32, #tpu.memory_space<vmem>>, vector<1x16x16x4xf32>
    %1 = vector.shape_cast %0 : vector<1x16x16x4xf32> to vector<256x4xf32>
    %cst = arith.constant dense<0.000000e+00> : vector<4xf32>
    %2 = vector.multi_reduction <add>, %1, %cst [0] : vector<256x4xf32> to vector<4xf32>
    %3 = vector.shape_cast %2 : vector<4xf32> to vector<1x4xf32>
    %4 = vector.shape_cast %3 : vector<1x4xf32> to vector<1x1x4xf32>
    %c0_3 = arith.constant 0 : index
    %c0_4 = arith.constant 0 : index
    %c0_5 = arith.constant 0 : index
    %5 = vector.load %arg2[%c0_3, %c0_4, %c0_5] : memref<1x1x4xf32, #tpu.memory_space<vmem>>, vector<1x1x4xf32>
    tpu.vector_store %arg2[%c0_3, %c0_4, %c0_5], %4 {strides = array<i32>} : memref<1x1x4xf32, #tpu.memory_space<vmem>>, vector<1x1x4xf32>,
    %6 = arith.mulf %1, %1 : vector<256x4xf32>
    %cst_6 = arith.constant dense<0.000000e+00> : vector<4xf32>
    %7 = vector.multi_reduction <add>, %6, %cst_6 [0] : vector<256x4xf32> to vector<4xf32>
    %8 = vector.shape_cast %7 : vector<4xf32> to vector<1x4xf32>
    %9 = vector.shape_cast %8 : vector<1x4xf32> to vector<1x1x4xf32>
    %c0_7 = arith.constant 0 : index
    %c0_8 = arith.constant 0 : index
    %c0_9 = arith.constant 0 : index
    %10 = vector.load %arg3[%c0_7, %c0_8, %c0_9] : memref<1x1x4xf32, #tpu.memory_space<vmem>>, vector<1x1x4xf32>
    tpu.vector_store %arg3[%c0_7, %c0_8, %c0_9], %9 {strides = array<i32>} : memref<1x1x4xf32, #tpu.memory_space<vmem>>, vector<1x1x4xf32>,
    return
  }
  func.func @transform_0(%arg0: i32) -> (i32, i32, i32, i32) {
    %c0_i32 = arith.constant 0 : i32
    %c0_i32_0 = arith.constant 0 : i32
    %c0_i32_1 = arith.constant 0 : i32
    %c0_i32_2 = arith.constant 0 : i32
    return %arg0, %c0_i32, %c0_i32_0, %c0_i32_1 : i32, i32, i32, i32
  }
  func.func @transform_1(%arg0: i32) -> (i32, i32, i32) {
    %c0_i32 = arith.constant 0 : i32
    %c0_i32_0 = arith.constant 0 : i32
    %c0_i32_1 = arith.constant 0 : i32
    return %arg0, %c0_i32, %c0_i32_0 : i32, i32, i32
  }
  func.func @transform_2(%arg0: i32) -> (i32, i32, i32) {
    %c0_i32 = arith.constant 0 : i32
    %c0_i32_0 = arith.constant 0 : i32
    %c0_i32_1 = arith.constant 0 : i32
    return %arg0, %c0_i32, %c0_i32_0 : i32, i32, i32
  }
}

</mosaic_0001>

<bundles_post_ra>
// kernel: tpu_custom_call.1
= control target key start
LH: loop header
LB: loop body
LE: loop exit
PB: predicated region body
PF: predicated region fallthrough
CT: control target
= control target key end

     0   :  { %8 = vsyncpa [#allocation3], 0  ;;  %s842_s0 = inlined_call_operand.vmem [shape: f32[2,16,16,4], index: 0, kind: input, shape index: {}]   ;;  %s843_s1 = inlined_call_operand.hbm [shape: f32[2,1,4], index: 1, kind: output, shape index: {0}]   ;;  %s844_s2 = inlined_call_operand.hbm [shape: f32[2,1,4], index: 2, kind: output, shape index: {1}]  }
   0x1   :  { %10 = vsyncpa [#allocation3 + $0x1], 0 }
   0x2   :  { %11 = vsyncpa [#allocation5], 0 }
   0x3   :  { %13 = vsyncpa [#allocation5 + $0x1], 0  ;;  %s634_s9 = smov 0   ;;  %s636_s10 = smov 0  }
   0x4   :  { %s638_s11 = smov 0   ;;  %s640_s12 = smov 0  }
   0x5 LB: > { %s655_s13 = sadd.s32 4294967295, %s617_s12   ;;  %s470_s14 = sadd.s32 4294967294, %s617_s12   ;;  %s617_s12 = sphi %s640_s12, %s850_s12   ;;  %s613_s11 = sphi %s638_s11, %s849_s11   ;;  %s609_s10 = sphi %s636_s10, %s848_s10   ;;  %s605_s9 = sphi %s634_s9, %s847_s9  }
   0x6   : > { %s659_s15 = sadd.s32 1, %s617_s12   ;;  %s52_s16 = sadd.s32 1, %s613_s11 }
   0x7   : > { %s49_s17 = ssub.s32 %s617_s12, %s659_s15  ;;  %p62_p0 = scmp.ne.s32.totalorder %s613_s11, %s609_s10 }
   0x8   : > { %p50_p1 = scmp.eq.s32.totalorder %s49_s17, 0  ;;  %p63_p2 = scmp.eq.s32.totalorder %s655_s13, 1 }
   0x9   : > { %p68_p3 = scmp.ne.s32.totalorder %s609_s10, %s605_s9  ;;  %p69_p4 = scmp.eq.s32.totalorder %s470_s14, 1 }
   0xa   : > { %s670_s18 = scalar_select %p50_p1, %s613_s11, %s52_s16  }
   0xb   : > { %p672_p5 = por %p63_p2, %p62_p0  ;;  %p676_p6 = por %p69_p4, %p68_p3 }
   0xc   : > { %p473_p7 = scmp.ge.s32.totalorder %s617_s12, 1  ;;  %p121_p8 = scmp.lt.s32.totalorder %s617_s12, 3 }
   0xe   : > { %p122_p9 = pnand %p473_p7, %p121_p8 }
   0xf   : > { %p146_p10 = scmp.lt.s32.totalorder (!%p122_p9), %s655_s13, 1  ;;  %s781_s26 = sand.u32 (!%p122_p9), 1, %s609_s10  }
  0x10   : > { %125 = sbr.rel (%p122_p9) target bundleno = 118 (0x76), region = 24  ;;  %s370_s29 = scalar_lea.hbm (!%p122_p9), %s843_s1, %s655_s13 }
  0x11   : > { %s139_s30 = scalar_lea.vmem (!%p122_p9), [#allocation2], %s781_s26  ;;  %s374_s4 = sshll.u32 (!%p122_p9), %s370_s29, 4  ;;  %s375_s4 = int_to_ptr.hbm [resolvable:$true] %s374_s4 }
  0x12   : > { %s791_s3 = sshll.u32 (!%p122_p9), %s139_s30, 4  ;;  %s358_s5 = scalar_lea.sflag (!%p122_p9), [#allocation3], %s781_s26  ;;  %s373_s3 = int_to_ptr.vmem [resolvable:$true] %s791_s3 }
  0x13   : > { %s537_s6 = sshra.s32 (!%p122_p9), %s375_s4, 4  ;;  %s543_s16 = scalar_lea.hbm (!%p122_p9), %s843_s1, 2  ;;  %s538_s6 = int_to_ptr.hbm [resolvable:$true] %s537_s6 }
  0x14   : > { %s539_s7 = scalar_lea.hbm (!%p122_p9), %s538_s6, 1  ;;  %p544_p0 = scmp.lt.s32.totalorder (!%p122_p9), %s538_s6, %s843_s1 }
  0x15   : > { %s147_s21 = scalar_select %p146_p10, %s655_s13, 1  ;;  %vm183_vm0 = vcmask 31744   ;;  %vm253_vm1 = vcmask 24576  }
  0x16   : > { %p540_p11 = scmp.ne.s32.totalorder %s538_s6, %s539_s7  ;;  %p545_p1 = scmp.lt.s32.totalorder %s543_s16, %s539_s7 }
  0x17   : > { %s478_s22 = sshll.u32 %s147_s21, 8 }
  0x18   : > { %s687_s25 = scalar_lea.vmem %s842_s0, %s478_s22  ;;  %p541_p12 = pnand %p540_p11, %p672_p5 }
  0x19   : > { %v151_v0 = vld [vmem:[%s687_s25] sm:$0xff]  ;;  %v152_v1 = vld [vmem:[%s687_s25 + $0x8] sm:$0xff]  ;;  %v153_v2 = vld [vmem:[%s687_s25 + $0x10] sm:$0xff]  ;;  %p546_p2 = por %p545_p1, %p544_p0 }
  0x1a   : > { %v184_v3 = vsel %vm183_vm0, %v151_v0, 0.0  ;;  %v185_v4 = vsel %vm183_vm0, %v152_v1, 0.0  ;;  %v187_v5 = vsel %vm183_vm0, %v153_v2, 0.0  ;;  %v154_v6 = vld [vmem:[%s687_s25 + $0x18] sm:$0xff]  ;;  %v155_v9 = vld [vmem:[%s687_s25 + $0x20] sm:$0xff]  ;;  %v156_v12 = vld [vmem:[%s687_s25 + $0x28] sm:$0xff]  ;;  %v255_v20 = vmul.f32 %v151_v0, %v151_v0  ;;  %p542_p13 = pneg %p541_p12 }
  0x1b   : > { %v186_v7 = vadd.f32 %v185_v4, %v184_v3  ;;  %v189_v8 = vsel %vm183_vm0, %v154_v6, 0.0  ;;  %v191_v11 = vsel %vm183_vm0, %v155_v9, 0.0  ;;  %v193_v14 = vsel %vm183_vm0, %v156_v12, 0.0  ;;  %v157_v15 = vld [vmem:[%s687_s25 + $0x30] sm:$0xff]  ;;  %v158_v18 = vld [vmem:[%s687_s25 + $0x38] sm:$0xff]  ;;  %v159_v24 = vld [vmem:[%s687_s25 + $0x40] sm:$0xff] }
  0x1c   : > { %v195_v17 = vsel %vm183_vm0, %v157_v15, 0.0  ;;  %v197_v21 = vsel %vm183_vm0, %v158_v18, 0.0  ;;  %v256_v22 = vmul.f32 %v152_v1, %v152_v1  ;;  %v257_v23 = vmul.f32 %v153_v2, %v153_v2  ;;  %v160_v28 = vld [vmem:[%s687_s25 + $0x48] sm:$0xff]  ;;  %v161_v35 = vld [vmem:[%s687_s25 + $0x50] sm:$0xff]  ;;  %v162_v41 = vld [vmem:[%s687_s25 + $0x58] sm:$0xff]  ;;  %p547_p3 = pnand %p546_p2, %p542_p13 }
  0x1d   : > { %v188_v10 = vadd.f32 %v187_v5, %v186_v7  ;;  %v199_v26 = vsel %vm183_vm0, %v159_v24, 0.0  ;;  %v258_v27 = vmul.f32 %v154_v6, %v154_v6  ;;  %v287_v30 = vsel %vm183_vm0, %v255_v20, 0.0  ;;  %v163_v47 = vld [vmem:[%s687_s25 + $0x60] sm:$0xff]  ;;  %v164_v53 = vld [vmem:[%s687_s25 + $0x68] sm:$0xff]  ;;  %v165_v59 = vld [vmem:[%s687_s25 + $0x70] sm:$0xff] }
  0x1e   : > { %v201_v31 = vsel %vm183_vm0, %v160_v28, 0.0  ;;  %v259_v32 = vmul.f32 %v155_v9, %v155_v9  ;;  %v288_v33 = vsel %vm183_vm0, %v256_v22, 0.0  ;;  %v290_v34 = vsel %vm183_vm0, %v257_v23, 0.0  ;;  %v166_v1 = vld [vmem:[%s687_s25 + $0x78] sm:$0xff]  ;;  %v167_v7 = vld [vmem:[%s687_s25 + $0x80] sm:$0xff] }
  0x1f   : > { %v190_v13 = vadd.f32 %v189_v8, %v188_v10  ;;  %v289_v37 = vadd.f32 %v288_v33, %v287_v30  ;;  %v203_v38 = vsel %vm183_vm0, %v161_v35, 0.0  ;;  %v260_v39 = vmul.f32 %v156_v12, %v156_v12 }
  0x20   : > { %v292_v40 = vsel %vm183_vm0, %v258_v27, 0.0  ;;  %v205_v44 = vsel %vm183_vm0, %v162_v41, 0.0  ;;  %v261_v45 = vmul.f32 %v157_v15, %v157_v15  ;;  %v294_v46 = vsel %vm183_vm0, %v259_v32, 0.0 }
  0x21   : > { %v192_v16 = vadd.f32 %v191_v11, %v190_v13  ;;  %v291_v43 = vadd.f32 %v290_v34, %v289_v37  ;;  %v207_v50 = vsel %vm183_vm0, %v163_v47, 0.0  ;;  %v262_v51 = vmul.f32 %v158_v18, %v158_v18  ;;  %v168_v13 = vld [vmem:[%s687_s25 + $0x88] sm:$0xff] }
  0x22   : > { %v296_v52 = vsel %vm183_vm0, %v260_v39, 0.0  ;;  %v209_v56 = vsel %vm183_vm0, %v164_v53, 0.0  ;;  %v263_v57 = vmul.f32 %v159_v24, %v159_v24  ;;  %v298_v58 = vsel %vm183_vm0, %v261_v45, 0.0  ;;  %v172_v37 = vld [vmem:[%s687_s25 + $0xa8] sm:$0xff] }
  0x23   : > { %v194_v19 = vadd.f32 %v193_v14, %v192_v16  ;;  %v293_v49 = vadd.f32 %v292_v40, %v291_v43  ;;  %v211_v62 = vsel %vm183_vm0, %v165_v59, 0.0  ;;  %v264_v63 = vmul.f32 %v160_v28, %v160_v28  ;;  %v173_v43 = vld [vmem:[%s687_s25 + $0xb0] sm:$0xff] }
  0x24   : > { %v300_v0 = vsel %vm183_vm0, %v262_v51, 0.0  ;;  %v213_v4 = vsel %vm183_vm0, %v166_v1, 0.0  ;;  %v265_v5 = vmul.f32 %v161_v35, %v161_v35  ;;  %v302_v6 = vsel %vm183_vm0, %v263_v57, 0.0 }
  0x25   : > { %v196_v25 = vadd.f32 %v195_v17, %v194_v19  ;;  %v295_v55 = vadd.f32 %v294_v46, %v293_v49  ;;  %v215_v10 = vsel %vm183_vm0, %v167_v7, 0.0  ;;  %v266_v11 = vmul.f32 %v162_v41, %v162_v41  ;;  %v169_v19 = vld [vmem:[%s687_s25 + $0x90] sm:$0xff]  ;;  %v174_v49 = vld [vmem:[%s687_s25 + $0xb8] sm:$0xff] }
  0x26   : > { %v304_v12 = vsel %vm183_vm0, %v264_v63, 0.0  ;;  %v217_v16 = vsel %vm183_vm0, %v168_v13, 0.0  ;;  %v267_v17 = vmul.f32 %v163_v47, %v163_v47  ;;  %v306_v18 = vsel %vm183_vm0, %v265_v5, 0.0 }
  0x27   : > { %v198_v29 = vadd.f32 %v197_v21, %v196_v25  ;;  %v297_v61 = vadd.f32 %v296_v52, %v295_v55  ;;  %v219_v22 = vsel %vm183_vm0, %v169_v19, 0.0  ;;  %v268_v23 = vmul.f32 %v164_v53, %v164_v53  ;;  %v170_v25 = vld [vmem:[%s687_s25 + $0x98] sm:$0xff]  ;;  %v175_v55 = vld [vmem:[%s687_s25 + $0xc0] sm:$0xff] }
  0x28   : > { %v308_v24 = vsel %vm183_vm0, %v266_v11, 0.0  ;;  %v221_v28 = vsel %vm183_vm0, %v170_v25, 0.0  ;;  %v310_v30 = vsel %vm183_vm0, %v267_v17, 0.0  ;;  %v270_v35 = vmul.f32 %v166_v1, %v166_v1 }
  0x29   : > { %v200_v36 = vadd.f32 %v199_v26, %v198_v29  ;;  %v299_v3 = vadd.f32 %v298_v58, %v297_v61  ;;  %v269_v29 = vmul.f32 %v165_v59, %v165_v59  ;;  %v225_v40 = vsel %vm183_vm0, %v172_v37, 0.0  ;;  %v176_v61 = vld [vmem:[%s687_s25 + $0xc8] sm:$0xff] }
  0x2a   : > { %v271_v41 = vmul.f32 %v167_v7, %v167_v7  ;;  %v227_v46 = vsel %vm183_vm0, %v173_v43, 0.0  ;;  %v272_v47 = vmul.f32 %v168_v13, %v168_v13  ;;  %v229_v52 = vsel %vm183_vm0, %v174_v49, 0.0 }
  0x2b   : > { %v202_v42 = vadd.f32 %v201_v31, %v200_v36  ;;  %v301_v9 = vadd.f32 %v300_v0, %v299_v3  ;;  %v171_v31 = vld [vmem:[%s687_s25 + $0xa0] sm:$0xff]  ;;  %v312_v36 = vsel %vm183_vm0, %v268_v23, 0.0  ;;  %v273_v53 = vmul.f32 %v169_v19, %v169_v19  ;;  %v177_v3 = vld [vmem:[%s687_s25 + $0xd0] sm:$0xff] }
  0x2c   : > { %v223_v34 = vsel %vm183_vm0, %v171_v31, 0.0  ;;  %v231_v58 = vsel %vm183_vm0, %v175_v55, 0.0  ;;  %v274_v59 = vmul.f32 %v170_v25, %v170_v25  ;;  %v233_v0 = vsel %vm183_vm0, %v176_v61, 0.0 }
  0x2d   : > { %v204_v48 = vadd.f32 %v203_v38, %v202_v42  ;;  %v303_v15 = vadd.f32 %v302_v6, %v301_v9  ;;  %v314_v42 = vsel %vm183_vm0, %v269_v29, 0.0  ;;  %v275_v1 = vmul.f32 %v171_v31, %v171_v31  ;;  %v178_v9 = vld [vmem:[%s687_s25 + $0xd8] sm:$0xff] }
  0x2e   : > { %v235_v6 = vsel %vm183_vm0, %v177_v3, 0.0  ;;  %v276_v7 = vmul.f32 %v172_v37, %v172_v37  ;;  %v277_v13 = vmul.f32 %v173_v43, %v173_v43  ;;  %v278_v19 = vmul.f32 %v174_v49, %v174_v49 }
  0x2f   : > { %v206_v54 = vadd.f32 %v205_v44, %v204_v48  ;;  %v305_v21 = vadd.f32 %v304_v12, %v303_v15  ;;  %v316_v48 = vsel %vm183_vm0, %v270_v35, 0.0  ;;  %v237_v12 = vsel %vm183_vm0, %v178_v9, 0.0  ;;  %v179_v15 = vld [vmem:[%s687_s25 + $0xe0] sm:$0xff] }
  0x30   : > { %v279_v25 = vmul.f32 %v175_v55, %v175_v55  ;;  %v280_v31 = vmul.f32 %v176_v61, %v176_v61  ;;  %v281_v37 = vmul.f32 %v177_v3, %v177_v3 }
  0x31   : > { %v208_v60 = vadd.f32 %v207_v50, %v206_v54  ;;  %v307_v27 = vadd.f32 %v306_v18, %v305_v21  ;;  %v318_v54 = vsel %vm183_vm0, %v271_v41, 0.0  ;;  %v239_v18 = vsel %vm183_vm0, %v179_v15, 0.0  ;;  %v180_v21 = vld [vmem:[%s687_s25 + $0xe8] sm:$0xff] }
  0x32   : > { %v282_v41 = vmul.f32 %v178_v9, %v178_v9  ;;  %v284_v49 = vmul.f32 %v180_v21, %v180_v21 }
  0x33   : > { %v210_v2 = vadd.f32 %v209_v56, %v208_v60  ;;  %v309_v33 = vadd.f32 %v308_v24, %v307_v27  ;;  %v320_v60 = vsel %vm183_vm0, %v272_v47, 0.0  ;;  %v241_v24 = vsel %vm183_vm0, %v180_v21, 0.0  ;;  %v181_v27 = vld [vmem:[%s687_s25 + $0xf0] sm:$0xff] }
  0x35   : > { %v212_v8 = vadd.f32 %v211_v62, %v210_v2  ;;  %v311_v39 = vadd.f32 %v310_v30, %v309_v33  ;;  %v322_v2 = vsel %vm183_vm0, %v273_v53, 0.0  ;;  %v243_v30 = vsel %vm183_vm0, %v181_v27, 0.0  ;;  %v182_v33 = vld [vmem:[%s687_s25 + $0xf8] sm:$0xff] }
  0x36   : > { %v285_v53 = vmul.f32 %v181_v27, %v181_v27 }
  0x37   : > { %v214_v14 = vadd.f32 %v213_v4, %v212_v8  ;;  %v313_v45 = vadd.f32 %v312_v36, %v311_v39  ;;  %v324_v8 = vsel %vm183_vm0, %v274_v59, 0.0  ;;  %v245_v36 = vsel %vm183_vm0, %v182_v33, 0.0 }
  0x38   : > { %v346_v61 = vsel %vm183_vm0, %v285_v53, 0.0 }
  0x39   : > { %v216_v20 = vadd.f32 %v215_v10, %v214_v14  ;;  %v315_v51 = vadd.f32 %v314_v42, %v313_v45  ;;  %v326_v14 = vsel %vm183_vm0, %v275_v1, 0.0  ;;  %v336_v42 = vsel %vm183_vm0, %v280_v31, 0.0 }
  0x3a   : > { %v283_v45 = vmul.f32 %v179_v15, %v179_v15 }
  0x3b   : > { %v218_v26 = vadd.f32 %v217_v16, %v216_v20  ;;  %v317_v57 = vadd.f32 %v316_v48, %v315_v51  ;;  %v328_v20 = vsel %vm183_vm0, %v276_v7, 0.0 }
  0x3d   : > { %v220_v32 = vadd.f32 %v219_v22, %v218_v26  ;;  %v319_v63 = vadd.f32 %v318_v54, %v317_v57  ;;  %v330_v26 = vsel %vm183_vm0, %v277_v13, 0.0  ;;  %v342_v54 = vsel %vm183_vm0, %v283_v45, 0.0 }
  0x3e   : > { %v286_v57 = vmul.f32 %v182_v33, %v182_v33 }
  0x3f   : > { %v222_v38 = vadd.f32 %v221_v28, %v220_v32  ;;  %v321_v5 = vadd.f32 %v320_v60, %v319_v63  ;;  %v332_v32 = vsel %vm183_vm0, %v278_v19, 0.0 }
  0x41   : > { %v224_v44 = vadd.f32 %v223_v34, %v222_v38  ;;  %v323_v11 = vadd.f32 %v322_v2, %v321_v5  ;;  %v334_v38 = vsel %vm183_vm0, %v279_v25, 0.0 }
  0x43   : > { %v226_v50 = vadd.f32 %v225_v40, %v224_v44  ;;  %v325_v17 = vadd.f32 %v324_v8, %v323_v11 }
  0x45   : > { %v228_v56 = vadd.f32 %v227_v46, %v226_v50  ;;  %v327_v23 = vadd.f32 %v326_v14, %v325_v17  ;;  %v338_v46 = vsel %vm183_vm0, %v281_v37, 0.0  ;;  %v340_v50 = vsel %vm183_vm0, %v282_v41, 0.0 }
  0x47   : > { %v230_v62 = vadd.f32 %v229_v52, %v228_v56  ;;  %v329_v29 = vadd.f32 %v328_v20, %v327_v23 }
  0x49   : > { %v232_v4 = vadd.f32 %v231_v58, %v230_v62  ;;  %v331_v35 = vadd.f32 %v330_v26, %v329_v29  ;;  %v344_v58 = vsel %vm183_vm0, %v284_v49, 0.0 }
  0x4b   : > { %v234_v10 = vadd.f32 %v233_v0, %v232_v4  ;;  %v333_v40 = vadd.f32 %v332_v32, %v331_v35  ;;  %v348_v0 = vsel %vm183_vm0, %v286_v57, 0.0 }
  0x4d   : > { %v236_v16 = vadd.f32 %v235_v6, %v234_v10  ;;  %v335_v44 = vadd.f32 %v334_v38, %v333_v40 }
  0x4f   : > { %v238_v22 = vadd.f32 %v237_v12, %v236_v16  ;;  %v337_v48 = vadd.f32 %v336_v42, %v335_v44 }
  0x51   : > { %v240_v28 = vadd.f32 %v239_v18, %v238_v22  ;;  %v339_v52 = vadd.f32 %v338_v46, %v337_v48 }
  0x53   : > { %v242_v34 = vadd.f32 %v241_v24, %v240_v28  ;;  %v341_v56 = vadd.f32 %v340_v50, %v339_v52 }
  0x55   : > { %v244_v39 = vadd.f32 %v243_v30, %v242_v34  ;;  %v343_v60 = vadd.f32 %v342_v54, %v341_v56 }
  0x57   : > { %v246_v43 = vadd.f32 %v245_v36, %v244_v39  ;;  %v345_v63 = vadd.f32 %v344_v58, %v343_v60 }
  0x59   : > { %v247_v47 = vrot.slane %v246_v43, 4  ;;  %v347_v2 = vadd.f32 %v346_v61, %v345_v63 }
  0x5b   : > { %v248_v51 = vadd.f32 %v247_v47, %v246_v43  ;;  %v349_v3 = vadd.f32 %v348_v0, %v347_v2 }
  0x5d   : > { %v249_v55 = vrot.slane %v248_v51, 2 }
  0x5f   : > { %v250_v59 = vadd.f32 %v249_v55, %v248_v51 }
  0x61   : > { %v251_v62 = vrot.slane %v250_v59, 1 }
  0x63   : > { %v252_v1 = vadd.f32 %v251_v62, %v250_v59 }
  0x65   : > { %254 = vst.msk [vmem:[%s139_s30] sm:$0x1] %vm253_vm1, %v252_v1 }
  0x66   : > { %550 = shalt.err (!%p547_p3)
}
  0x67   : > { %479 = dma.vmem_to_hbm [thread:$0]  (%p672_p5), %s373_s3, 16, %s375_s4, %s358_s5   ;;  %v350_v4 = vrot.slane %v349_v3, 4 }
  0x68   : > { %s383_s24 = scalar_lea.hbm %s844_s2, %s655_s13  ;;  %s145_s25 = scalar_lea.vmem [#allocation4], %s781_s26 }
  0x69   : > { %v351_v5 = vadd.f32 %v350_v4, %v349_v3  ;;  %s385_s27 = sshll.u32 %s145_s25, 4  ;;  %s387_s28 = sshll.u32 %s383_s24, 4  ;;  %s386_s27 = int_to_ptr.vmem [resolvable:$true] %s385_s27  ;;  %s388_s28 = int_to_ptr.hbm [resolvable:$true] %s387_s28 }
  0x6a   : > { %s362_s29 = scalar_lea.sflag [#allocation5], %s781_s26  ;;  %s565_s30 = sshra.s32 %s388_s28, 4  ;;  %s566_s30 = int_to_ptr.hbm [resolvable:$true] %s565_s30 }
  0x6b   : > { %v352_v6 = vrot.slane %v351_v5, 2  ;;  %s567_s3 = scalar_lea.hbm %s566_s30, 1  ;;  %s571_s5 = scalar_lea.hbm %s844_s2, 2 }
  0x6c   : > { %p568_p4 = scmp.ne.s32.totalorder %s566_s30, %s567_s3  ;;  %p572_p9 = scmp.lt.s32.totalorder %s566_s30, %s844_s2 }
  0x6d   : > { %v353_v7 = vadd.f32 %v352_v6, %v351_v5  ;;  %p573_p10 = scmp.lt.s32.totalorder %s571_s5, %s567_s3 }
  0x6e   : > { %p569_p7 = pnand %p568_p4, %p672_p5 }
  0x6f   : > { %v354_v8 = vrot.slane %v353_v7, 1  ;;  %p574_p11 = por %p573_p10, %p572_p9 }
  0x70   : > { %p570_p8 = pneg %p569_p7 }
  0x71   : > { %v355_v9 = vadd.f32 %v354_v8, %v353_v7 }
  0x72   : > { %p575_p12 = pnand %p574_p11, %p570_p8 }
  0x73   : > { %356 = vst.msk [vmem:[%s145_s25] sm:$0x1] %vm253_vm1, %v355_v9 }
  0x74   : > { %578 = shalt.err (!%p575_p12)
}
  0x75   : > { %480 = dma.vmem_to_hbm [thread:$0]  (%p672_p5), %s386_s27, 16, %s388_s28, %s362_s29  }
  0x76 PF: > { %p490_p13 = scmp.ge.s32.totalorder %s617_s12, 2  ;;  %s399_s26 = sand.u32 1, %s605_s9  }
  0x77   : > { %s400_s8 = scalar_lea.sflag [#allocation3], %s399_s26 }
  0x78   : > { %p484_p0 = pnand %p490_p13, %p676_p6 }
  0x7a   : > { %p485_p1 = pneg %p484_p0 }
  0x7c   : > { %596 = dma.done.wait (%p485_p1), %s400_s8, 16  }
  0x7d   : > { %598 = vsyncadd (%p485_p1), %s400_s8, 4294967280  ;;  %s409_s14 = scalar_lea.sflag [#allocation5], %s399_s26 }
  0x7e   : > { %600 = dma.done.wait (%p485_p1), %s409_s14, 16  }
  0x7f   : > { %602 = vsyncadd (%p485_p1), %s409_s14, 4294967280  ;;  %p16_p5 = scmp.ge.s32.totalorder %s659_s15, 4   ;;  %s847_s9 = smov %s609_s10 }
  0x80   : > { %s848_s10 = smov %s613_s11  ;;  %s849_s11 = smov %s670_s18 }
  0x81   : > { %s850_s12 = smov %s659_s15  ;;  %18 = sbr.rel (!%p16_p5) target bundleno = 5 (0x5), region = 76 }
  0x86   :  { %414 = vsyncpa [#allocation3], 1 }
  0x87   :  { %416 = vsyncpa [#allocation3 + $0x1], 1 }
  0x88   :  { %417 = vsyncpa [#allocation5], 1 }
  0x89   :  { %419 = vsyncpa [#allocation5 + $0x1], 1 }

</bundles_post_ra>
